<compile_context>
chip_gen: v6e
topology: v6e:2x2x1
jax: 0.10.0
libtpu: 0.0.40
codegen_flags: <defaults>
</compile_context>

<pallas_src>
import functools

import jax
import jax.numpy as jnp
from jax.experimental import pallas as pl
from jax.experimental.pallas import tpu as pltpu


def _round_up(x, m):
    return (x + m - 1) // m * m


@functools.lru_cache(maxsize=None)
def _tpu_config():
    """Per-generation (row-tile target, scoped VMEM limit)."""
    vmem = 64 * 1024 * 1024
    try:
        vmem = int(pltpu.get_tpu_info().vmem_capacity_bytes)
    except Exception:
        pass
    if vmem >= 100 * 1024 * 1024:           # v4 / v5e / v6e: 128 MiB VMEM
        return 2048, min(96 * 1024 * 1024, (vmem * 3) // 4)
    # v7x: 64 MiB VMEM, 2 TensorCores -> keep a conservative budget.
    return 1024, min(44 * 1024 * 1024, (vmem * 3) // 4)


def _mosaic_params():
    _, vmem_limit = _tpu_config()
    return pltpu.CompilerParams(
        dimension_semantics=("parallel",),   # M tiles are independent
        vmem_limit_bytes=vmem_limit,
    )


def _choose_tiling(m):
    """Pick (tm, m_pad) for the pixel axis M.

    * M < 256: one full-extent tile, zero padding (no HBM pad copy).
    * else: lane-aligned (multiple-of-128) tiles, at least 2 of them so the
      "parallel" grid axis can shard across v7x's two TensorCores, choosing
      the tile that minimizes pad waste (prefer exact divisors).
    """
    target, _ = _tpu_config()
    if m < 256:
        return m, m
    cap = max(128, min(target, (m // 2) // 128 * 128))
    best_tm, best_pad = 128, _round_up(m, 128)
    for tm in range(cap, 127, -128):
        m_pad = _round_up(m, tm)
        if m_pad == m:
            return tm, m_pad
        if m_pad < best_pad:
            best_tm, best_pad = tm, m_pad
    return best_tm, best_pad


def _pad_cols(a, cols):
    if a.shape[1] == cols:
        return a
    return jnp.pad(a, ((0, 0), (0, cols - a.shape[1])))


def _col(v):
    """Per-channel vector -> (C, 1) f32 column (broadcasts over lanes)."""
    return v.reshape(-1, 1).astype(jnp.float32)


# ----------------------------------------------------------------------------
# Kernels (transposed / lane-dense orientation: tiles are (channels, TM))
# ----------------------------------------------------------------------------
def _down_conv_kernel(has_post, final_relu, has_aux, *refs):
    """y(Cout,TM) = W @ patches + b; optional fused ReLU->BN post-op; optional
    aux = relu(y_final)*aux_scale + aux_shift (pre-activation of ResBlock 0)."""
    it = iter(refs)
    w_ref, p_ref, b_ref = next(it), next(it), next(it)
    s_ref = t_ref = as_ref = at_ref = None
    if has_post:
        s_ref, t_ref = next(it), next(it)
    if has_aux:
        as_ref, at_ref = next(it), next(it)
    out_ref = next(it)
    aux_ref = next(it) if has_aux else None

    # bf16 x bf16 -> f32 accumulate on the MXU; TM fills the MXU N dimension.
    y = jnp.dot(w_ref[...], p_ref[...], preferred_element_type=jnp.float32)
    y = y + b_ref[...]
    if has_post:                      # folded ReLU -> BatchNorm (eval mode)
        y = jnp.maximum(y, 0.0) * s_ref[...] + t_ref[...]
    if final_relu:
        y = jnp.maximum(y, 0.0)
    out_ref[...] = y.astype(out_ref.dtype)
    if has_aux:                       # fused ReLU -> BN1 of the first ResBlock
        aux_ref[...] = (jnp.maximum(y, 0.0) * as_ref[...]
                        + at_ref[...]).astype(aux_ref.dtype)


def _res_block_kernel(final_relu, has_aux, *refs):
    """Fused ResBlock: conv3x3 -> ReLU/BN -> conv1x1(bf16) -> +residual [-> ReLU].
    Optional aux output = relu(out)*s + t (pre-activation of the next ResBlock)."""
    it = iter(refs)
    (w1_ref, hp_ref, b1_ref, s2_ref, t2_ref,
     w2_ref, b2_ref, res_ref) = (next(it), next(it), next(it), next(it),
                                 next(it), next(it), next(it), next(it))
    as_ref = at_ref = None
    if has_aux:
        as_ref, at_ref = next(it), next(it)
    out_ref = next(it)
    aux_ref = next(it) if has_aux else None

    # conv1 (3x3) on the pre-activated, zero-padded patches (padding applied
    # AFTER the ReLU/BN affine, matching the reference).
    t = jnp.dot(w1_ref[...], hp_ref[...], preferred_element_type=jnp.float32)
    t = jnp.maximum(t + b1_ref[...], 0.0) * s2_ref[...] + t2_ref[...]
    # conv2 (1x1): bf16 operands, f32 accumulate; residual add stays f32.
    y = jnp.dot(w2_ref[...], t.astype(jnp.bfloat16),
                preferred_element_type=jnp.float32)
    y = y + b2_ref[...] + res_ref[...]
    if final_relu:
        y = jnp.maximum(y, 0.0)
    out_ref[...] = y.astype(out_ref.dtype)
    if has_aux:
        aux_ref[...] = (jnp.maximum(y, 0.0) * as_ref[...]
                        + at_ref[...]).astype(aux_ref.dtype)


# ----------------------------------------------------------------------------
# pallas_call wrappers (M-tiled along lanes, resident weights)
# ----------------------------------------------------------------------------
def down_conv(w_mat, patches, bias, *, post=None, aux=None, final_relu=False,
              out_dtype=jnp.float32):
    cout, k = w_mat.shape
    _, m = patches.shape
    has_post = post is not None
    has_aux = aux is not None

    tm, m_pad = _choose_tiling(m)
    patches = _pad_cols(patches.astype(jnp.bfloat16), m_pad)

    row_spec = lambda r: pl.BlockSpec((r, tm), lambda i: (0, i))
    fix_spec = lambda r, c: pl.BlockSpec((r, c), lambda i: (0, 0))

    inputs = [w_mat.astype(jnp.bfloat16), patches, _col(bias)]
    in_specs = [fix_spec(cout, k), row_spec(k), fix_spec(cout, 1)]
    if has_post:
        inputs += [_col(post[0]), _col(post[1])]
        in_specs += [fix_spec(cout, 1), fix_spec(cout, 1)]
    if has_aux:
        inputs += [_col(aux[0]), _col(aux[1])]
        in_specs += [fix_spec(cout, 1), fix_spec(cout, 1)]

    out_shape = [jax.ShapeDtypeStruct((cout, m_pad), out_dtype)]
    out_specs = [row_spec(cout)]
    if has_aux:
        out_shape.append(jax.ShapeDtypeStruct((cout, m_pad), jnp.bfloat16))
        out_specs.append(row_spec(cout))

    outs = pl.pallas_call(
        functools.partial(_down_conv_kernel, has_post, final_relu, has_aux),
        grid=(m_pad // tm,),
        in_specs=in_specs,
        out_specs=out_specs,
        out_shape=out_shape,
        compiler_params=_mosaic_params(),
    )(*inputs)
    if has_aux:
        return outs[0][:, :m], outs[1][:, :m]
    return outs[0][:, :m]


def res_block(w1_mat, h_patches, b1, bn2_scale, bn2_shift, w2_mat, b2,
              residual, *, aux=None, final_relu=False):
    cr, k1 = w1_mat.shape
    c = w2_mat.shape[0]
    _, m = h_patches.shape
    has_aux = aux is not None

    tm, m_pad = _choose_tiling(m)
    h_patches = _pad_cols(h_patches.astype(jnp.bfloat16), m_pad)
    residual = _pad_cols(residual.astype(jnp.float32), m_pad)

    row_spec = lambda r: pl.BlockSpec((r, tm), lambda i: (0, i))
    fix_spec = lambda r, c_: pl.BlockSpec((r, c_), lambda i: (0, 0))

    inputs = [w1_mat.astype(jnp.bfloat16), h_patches, _col(b1),
              _col(bn2_scale), _col(bn2_shift),
              w2_mat.astype(jnp.bfloat16), _col(b2), residual]
    in_specs = [fix_spec(cr, k1), row_spec(k1), fix_spec(cr, 1),
                fix_spec(cr, 1), fix_spec(cr, 1),
                fix_spec(c, cr), fix_spec(c, 1), row_spec(c)]
    if has_aux:
        inputs += [_col(aux[0]), _col(aux[1])]
        in_specs += [fix_spec(c, 1), fix_spec(c, 1)]

    out_shape = [jax.ShapeDtypeStruct((c, m_pad), jnp.float32)]
    out_specs = [row_spec(c)]
    if has_aux:
        out_shape.append(jax.ShapeDtypeStruct((c, m_pad), jnp.bfloat16))
        out_specs.append(row_spec(c))

    outs = pl.pallas_call(
        functools.partial(_res_block_kernel, final_relu, has_aux),
        grid=(m_pad // tm,),
        in_specs=in_specs,
        out_specs=out_specs,
        out_shape=out_shape,
        compiler_params=_mosaic_params(),
    )(*inputs)
    if has_aux:
        return outs[0][:, :m], outs[1][:, :m]
    return outs[0][:, :m]


# ----------------------------------------------------------------------------
# Glue: transposed im2col (plain JAX strided slices) and weight reshaping
# ----------------------------------------------------------------------------
def im2col_t(x_cnhw, kh, kw, stride, pad):
    """x: (C,N,H,W) -> patches (kh*kw*C, N*Ho*Wo), K ordered (kh, kw, C)."""
    C, N, H, W = x_cnhw.shape
    x = jnp.pad(x_cnhw, ((0, 0), (0, 0), (pad, pad), (pad, pad)))
    Ho = (H + 2 * pad - kh) // stride + 1
    Wo = (W + 2 * pad - kw) // stride + 1
    cols = []
    for i in range(kh):
        for j in range(kw):
            cols.append(
                x[:, :, i:i + stride * Ho:stride, j:j + stride * Wo:stride])
    p = jnp.stack(cols, axis=0)                   # (kh*kw, C, N, Ho, Wo)
    return p.reshape(kh * kw * C, N * Ho * Wo), (N, Ho, Wo)


def w_oihw_to_tmat(w):
    """(Cout, Cin, kh, kw) -> (Cout, kh*kw*Cin) matching im2col_t K ordering."""
    cout, cin, kh, kw = w.shape
    return jnp.transpose(w, (0, 2, 3, 1)).reshape(cout, kh * kw * cin)


# ----------------------------------------------------------------------------
# Parameter initialization (deterministic, eval-mode BN folded to scale/shift)
# ----------------------------------------------------------------------------
def _make_conv(key, cin, cout, k):
    k1, k2 = jax.random.split(key)
    w = 0.05 * jax.random.normal(k1, (cout, cin, k, k), jnp.float32)   # OIHW
    b = 0.05 * jax.random.normal(k2, (cout,), jnp.float32)
    return w, b


def _make_bn(key, c, eps=1e-5):
    k1, k2, k3, k4 = jax.random.split(key, 4)
    gamma = 1.0 + 0.1 * jax.random.normal(k1, (c,), jnp.float32)
    beta = 0.1 * jax.random.normal(k2, (c,), jnp.float32)
    mean = 0.1 * jax.random.normal(k3, (c,), jnp.float32)
    var = 1.0 + 0.1 * jnp.abs(jax.random.normal(k4, (c,), jnp.float32))
    scale = gamma / jnp.sqrt(var + eps)
    shift = beta - mean * scale
    return scale, shift


def init_params(key, in_channel, channel, n_res_block, n_res_channel, stride):
    if stride == 4:
        convs = [(in_channel, channel // 2, 4, 2, 1),
                 (channel // 2, channel, 4, 2, 1),
                 (channel, channel, 3, 1, 1)]
    elif stride == 2:
        convs = [(in_channel, channel // 2, 4, 2, 1),
                 (channel // 2, channel, 3, 1, 1)]
    elif stride == 8:
        convs = [(in_channel, channel // 2, 4, 2, 1),
                 (channel // 2, channel // 2, 4, 2, 1),
                 (channel // 2, channel // 2, 4, 2, 1),
                 (channel // 2, channel, 3, 1, 1)]
    elif stride == 16:
        convs = ([(in_channel, channel // 2, 4, 2, 1)]
                 + [(channel // 2, channel // 2, 4, 2, 1)] * 3
                 + [(channel // 2, channel, 3, 1, 1)])
    else:
        raise NotImplementedError

    keys = iter(jax.random.split(key, 2 * len(convs) + 4 * n_res_block + 1))
    down = []
    for idx, (cin, cout, k, s, p) in enumerate(convs):
        w, b = _make_conv(next(keys), cin, cout, k)
        if idx < len(convs) - 1:          # ReLU + BN follow every conv but last
            bs, bt = _make_bn(next(keys), cout)
        else:
            next(keys)
            bs, bt = None, None
        down.append(dict(w=w, b=b, stride=s, pad=p, bn_scale=bs, bn_shift=bt))

    res = []
    for _ in range(n_res_block):
        bs1, bt1 = _make_bn(next(keys), channel)
        w1, b1 = _make_conv(next(keys), channel, n_res_channel, 3)
        bs2, bt2 = _make_bn(next(keys), n_res_channel)
        w2, b2 = _make_conv(next(keys), n_res_channel, channel, 1)
        res.append(dict(bn1_scale=bs1, bn1_shift=bt1, w1=w1, b1=b1,
                        bn2_scale=bs2, bn2_shift=bt2, w2=w2, b2=b2))
    return dict(down=down, res=res)


# ----------------------------------------------------------------------------
# Encoder forward (Pallas path, channel-major / lane-dense layout)
# ----------------------------------------------------------------------------
def encoder_forward(x_nchw, params):
    down, res = params['down'], params['res']
    x = jnp.transpose(x_nchw, (1, 0, 2, 3)).astype(jnp.bfloat16)   # CNHW, bf16

    x_res = h_act = None
    spatial = None
    C = 0
    n_down = len(down)
    for li, layer in enumerate(down):
        w, b = layer['w'], layer['b']
        cout = w.shape[0]
        kh, kw = w.shape[2], w.shape[3]
        patches, (N, Ho, Wo) = im2col_t(x, kh, kw, layer['stride'], layer['pad'])
        w_mat = w_oihw_to_tmat(w)
        is_last = li == n_down - 1
        if not is_last:
            # conv -> ReLU -> BN fused; bf16 output only feeds the next im2col
            out = down_conv(w_mat, patches, b,
                            post=(layer['bn_scale'], layer['bn_shift']),
                            out_dtype=jnp.bfloat16)
            x = out.reshape(cout, N, Ho, Wo)
        elif not res:
            out = down_conv(w_mat, patches, b, final_relu=True)
            y = out.reshape(cout, N, Ho, Wo)
            return jnp.transpose(y, (1, 0, 2, 3))
        else:
            # raw conv output (residual, f32) + fused ReLU->BN1 of ResBlock 0
            x_res, h_act = down_conv(
                w_mat, patches, b,
                aux=(res[0]['bn1_scale'], res[0]['bn1_shift']))
            C = cout
            spatial = (N, Ho, Wo)

    N, Ho, Wo = spatial
    h = h_act.reshape(C, N, Ho, Wo)          # bf16 pre-activated conv1 input
    for ri, rp in enumerate(res):
        hp, _ = im2col_t(h, 3, 3, 1, 1)      # zero pad AFTER the ReLU/BN affine
        is_last_res = ri == len(res) - 1
        aux = None if is_last_res else (res[ri + 1]['bn1_scale'],
                                        res[ri + 1]['bn1_shift'])
        out = res_block(w_oihw_to_tmat(rp['w1']), hp, rp['b1'],
                        rp['bn2_scale'], rp['bn2_shift'],
                        w_oihw_to_tmat(rp['w2']), rp['b2'],
                        x_res, aux=aux, final_relu=is_last_res)
        if is_last_res:
            x_res = out
        else:
            x_res, h_act = out
            h = h_act.reshape(C, N, Ho, Wo)

    return jnp.transpose(x_res.reshape(C, N, Ho, Wo), (1, 0, 2, 3))   # NCHW


# ----------------------------------------------------------------------------
# Pure-JAX reference (for correctness check)
# ----------------------------------------------------------------------------
def _conv_ref(x, w, b, stride, pad):
    w_hwio = jnp.transpose(w, (2, 3, 1, 0))
    y = jax.lax.conv_general_dilated(x, w_hwio, (stride, stride),
                                     [(pad, pad), (pad, pad)],
                                     dimension_numbers=('NHWC', 'HWIO', 'NHWC'))
    return y + b


def encoder_ref(x_nchw, params):
    x = jnp.transpose(x_nchw, (0, 2, 3, 1)).astype(jnp.float32)
    for layer in params['down']:
        x = _conv_ref(x, layer['w'], layer['b'], layer['stride'], layer['pad'])
        if layer['bn_scale'] is not None:
            x = jnp.maximum(x, 0.0) * layer['bn_scale'] + layer['bn_shift']
    for rp in params['res']:
        h = jnp.maximum(x, 0.0) * rp['bn1_scale'] + rp['bn1_shift']
        h = _conv_ref(h, rp['w1'], rp['b1'], 1, 1)
        h = jnp.maximum(h, 0.0) * rp['bn2_scale'] + rp['bn2_shift']
        h = _conv_ref(h, rp['w2'], rp['b2'], 1, 0)
        x = x + h
    x = jnp.maximum(x, 0.0)
    return jnp.transpose(x, (0, 3, 1, 2))


# ----------------------------------------------------------------------------
if __name__ == "__main__":
    key = jax.random.PRNGKey(0)
    kx, kp = jax.random.split(key)

    in_channel, channel, n_res_block, n_res_channel, stride = 3, 32, 2, 8, 4
    x = jax.random.normal(kx, (2, in_channel, 16, 16), jnp.float32)
    params = init_params(kp, in_channel, channel, n_res_block, n_res_channel,
                         stride)

    out = jax.block_until_ready(encoder_forward(x, params))
    ref = jax.block_until_ready(encoder_ref(x, params))

    assert out.shape == (2, channel, 16 // stride, 16 // stride), out.shape
    max_err = float(jnp.max(jnp.abs(out - ref)))
    assert jnp.allclose(out, ref, atol=2e-2, rtol=2e-2), max_err

    print("KERNEL_OK")
</pallas_src>

<mosaic_0001>
module attributes {stable_mosaic.version = 11 : i64} {
  func.func @_down_conv_kernel(%arg0: i32, %arg1: memref<16x48xbf16, #tpu.memory_space<vmem>>, %arg2: memref<48x128xbf16, #tpu.memory_space<vmem>>, %arg3: memref<16x1xf32, #tpu.memory_space<vmem>>, %arg4: memref<16x1xf32, #tpu.memory_space<vmem>>, %arg5: memref<16x1xf32, #tpu.memory_space<vmem>>, %arg6: memref<16x128xbf16, #tpu.memory_space<vmem>>) attributes {dimension_semantics = [#tpu.dimension_semantics<parallel>], iteration_bounds = array<i64: 1>, scalar_prefetch = 0 : i64, scratch_operands = 0 : i64, tpu.core_type = #tpu.core_type<tc>, window_params = [{pipeline_mode = #tpu.pipeline_mode<synchronous>, transform_indices = @transform_0, window_bounds = array<i64: 16, 48>}, {transform_indices = @transform_1, window_bounds = array<i64: 48, 128>}, {pipeline_mode = #tpu.pipeline_mode<synchronous>, transform_indices = @transform_2, window_bounds = array<i64: 16, 1>}, {pipeline_mode = #tpu.pipeline_mode<synchronous>, transform_indices = @transform_3, window_bounds = array<i64: 16, 1>}, {pipeline_mode = #tpu.pipeline_mode<synchronous>, transform_indices = @transform_4, window_bounds = array<i64: 16, 1>}, {transform_indices = @transform_5, window_bounds = array<i64: 16, 128>}]} {
    %c0 = arith.constant 0 : index
    %c0_0 = arith.constant 0 : index
    %0 = vector.load %arg1[%c0, %c0_0] : memref<16x48xbf16, #tpu.memory_space<vmem>>, vector<16x48xbf16>
    %c0_1 = arith.constant 0 : index
    %c0_2 = arith.constant 0 : index
    %1 = vector.load %arg2[%c0_1, %c0_2] : memref<48x128xbf16, #tpu.memory_space<vmem>>, vector<48x128xbf16>
    %cst = arith.constant dense<0.000000e+00> : vector<16x128xf32>
    %2 = tpu.matmul %0, %1, %cst {dimension_numbers = #tpu.dot_dimension_numbers<[1], [0], [0], [1], [0, 0, 1, 1], [], []>} : vector<16x48xbf16>, vector<48x128xbf16>, vector<16x128xf32> -> vector<16x128xf32>
    %c0_3 = arith.constant 0 : index
    %c0_4 = arith.constant 0 : index
    %3 = vector.load %arg3[%c0_3, %c0_4] : memref<16x1xf32, #tpu.memory_space<vmem>>, vector<16x1xf32>
    %4 = vector.broadcast %3 : vector<16x1xf32> to vector<16x128xf32>
    %5 = arith.addf %2, %4 : vector<16x128xf32>
    %cst_5 = arith.constant 0.000000e+00 : f32
    %6 = vector.broadcast %cst_5 : f32 to vector<16x128xf32>
    %7 = arith.maximumf %5, %6 : vector<16x128xf32>
    %c0_6 = arith.constant 0 : index
    %c0_7 = arith.constant 0 : index
    %8 = vector.load %arg4[%c0_6, %c0_7] : memref<16x1xf32, #tpu.memory_space<vmem>>, vector<16x1xf32>
    %9 = vector.broadcast %8 : vector<16x1xf32> to vector<16x128xf32>
    %10 = arith.mulf %7, %9 : vector<16x128xf32>
    %c0_8 = arith.constant 0 : index
    %c0_9 = arith.constant 0 : index
    %11 = vector.load %arg5[%c0_8, %c0_9] : memref<16x1xf32, #tpu.memory_space<vmem>>, vector<16x1xf32>
    %12 = vector.broadcast %11 : vector<16x1xf32> to vector<16x128xf32>
    %13 = arith.addf %10, %12 : vector<16x128xf32>
    %14 = arith.truncf %13 : vector<16x128xf32> to vector<16x128xbf16>
    %c0_10 = arith.constant 0 : index
    %c0_11 = arith.constant 0 : index
    %15 = vector.load %arg6[%c0_10, %c0_11] : memref<16x128xbf16, #tpu.memory_space<vmem>>, vector<16x128xbf16>
    tpu.vector_store %arg6[%c0_10, %c0_11], %14 {strides = array<i32>} : memref<16x128xbf16, #tpu.memory_space<vmem>>, vector<16x128xbf16>,
    return
  }
  func.func @transform_0(%arg0: i32) -> (i32, i32) {
    %c0_i32 = arith.constant 0 : i32
    %c0_i32_0 = arith.constant 0 : i32
    %c0_i32_1 = arith.constant 0 : i32
    return %c0_i32, %c0_i32_0 : i32, i32
  }
  func.func @transform_1(%arg0: i32) -> (i32, i32) {
    %c0_i32 = arith.constant 0 : i32
    %c0_i32_0 = arith.constant 0 : i32
    return %c0_i32, %arg0 : i32, i32
  }
  func.func @transform_2(%arg0: i32) -> (i32, i32) {
    %c0_i32 = arith.constant 0 : i32
    %c0_i32_0 = arith.constant 0 : i32
    %c0_i32_1 = arith.constant 0 : i32
    return %c0_i32, %c0_i32_0 : i32, i32
  }
  func.func @transform_3(%arg0: i32) -> (i32, i32) {
    %c0_i32 = arith.constant 0 : i32
    %c0_i32_0 = arith.constant 0 : i32
    %c0_i32_1 = arith.constant 0 : i32
    return %c0_i32, %c0_i32_0 : i32, i32
  }
  func.func @transform_4(%arg0: i32) -> (i32, i32) {
    %c0_i32 = arith.constant 0 : i32
    %c0_i32_0 = arith.constant 0 : i32
    %c0_i32_1 = arith.constant 0 : i32
    return %c0_i32, %c0_i32_0 : i32, i32
  }
  func.func @transform_5(%arg0: i32) -> (i32, i32) {
    %c0_i32 = arith.constant 0 : i32
    %c0_i32_0 = arith.constant 0 : i32
    return %c0_i32, %arg0 : i32, i32
  }
}

</mosaic_0001>

<bundles_post_ra>
// kernel: tpu_custom_call.1
= control target key start
LH: loop header
LB: loop body
LE: loop exit
PB: predicated region body
PF: predicated region fallthrough
CT: control target
= control target key end

     0   :  { %v228_v1 = vmov 0.0   ;;  %vm229_vm0 = vmmov 0   ;;  %v230_v3 = vmov 0   ;;  %s297_s0 = inlined_call_operand.vmem [shape: bf16[16,48], index: 0, kind: input, shape index: {}]   ;;  %s298_s1 = inlined_call_operand.vmem [shape: bf16[48,128], index: 1, kind: input, shape index: {}]   ;;  %s299_s2 = inlined_call_operand.vmem [shape: f32[16,1], index: 2, kind: input, shape index: {}]   ;;  %s300_s3 = inlined_call_operand.vmem [shape: f32[16,1], index: 3, kind: input, shape index: {}]   ;;  %s301_s4 = inlined_call_operand.vmem [shape: f32[16,1], index: 4, kind: input, shape index: {}]   ;;  %s302_s5 = inlined_call_operand.hbm [shape: bf16[16,128], index: 5, kind: output, shape index: {}]  }
   0x1   :  { %v202_v0 = vld [vmem:[%s298_s1 + $0x10] sm:$0xff]   ;;  %184 = vmatprep.subr.bf16.mxu0 %v228_v1  ;;  %v203_v2 = vld [vmem:[%s298_s1 + $0x8] sm:$0xff]   ;;  %190 = vmatprep.mubr.msk.bf16.mxu0 %vm229_vm0, %v228_v1  ;;  %v30_v4 = vld [vmem:[%s299_s2] sm:$0xff] }
   0x2   :  { %185 = vmatpush3.bf16.msra.mxu0 %v202_v0  ;;  %200 = vset.pattern.permute.xlu0 %v230_v3  ;;  %v112_v5 = vld [vmem:[%s300_s3] sm:$0xff]  ;;  %v31_v7 = vld [vmem:[%s299_s2 + $0x8] sm:$0xff] }
   0x3   :  { %186 = vmatprep.subr.bf16.mxu0 %v228_v1  ;;  %201 = vset.pattern.permute.xlu1 %v230_v3  ;;  %v204_v6 = vld [vmem:[%s298_s1] sm:$0xff]   ;;  %v113_v8 = vld [vmem:[%s300_s3 + $0x8] sm:$0xff] }
   0x4   :  { %34 = vperm.xlu0 %200, %v30_v4   ;;  %116 = vperm.xlu1 %201, %v112_v5  }
   0x6   :  { %187 = vmatpush3.bf16.msra.mxu0 %v203_v2 }
   0x7   :  { %10 = vsyncpa [#allocation3], 0  ;;  %188 = vmatprep.subr.bf16.mxu0 %v228_v1  ;;  %v205_v9 = vld [vmem:[%s297_s0] sm:$0xff]   ;;  %vm65_vm1 = vcmask 392192   ;;  %v127_v11 = vld [vmem:[%s301_s4 + $0x8] sm:$0xff]  ;;  %s231_s0 = smov [#allocation2]  }
   0x8   :  { %39 = vperm.xlu0 %200, %v31_v7   ;;  %121 = vperm.xlu1 %201, %v113_v8   ;;  %v126_v10 = vld [vmem:[%s301_s4] sm:$0xff]  ;;  %s155_s3 = sshll.u32 %s231_s0, 4  ;;  %s156_s3 = int_to_ptr.vmem [resolvable:$true] %s155_s3 }
   0x9   :  { %s206_s4 = scalar_lea.vmem %s156_s3, 128  ;;  %p211_p1 = scmp.lt.s32.totalorder %s156_s3, %s156_s3 }
   0xa   :  { %189 = vmatpush3.bf16.msra.mxu0 %v204_v6  ;;  %p207_p0 = scmp.ne.s32.totalorder %s156_s3, %s206_s4  ;;  %p212_p2 = scmp.lt.s32.totalorder %s206_s4, %s206_s4 }
   0xc   :  { %130 = vperm.xlu0 %200, %v126_v10   ;;  %135 = vperm.xlu1 %201, %v127_v11   ;;  %p213_p3 = por %p212_p2, %p211_p1 }
   0xd   :  { %191 = vmatmul.mubr.msk.bf16.vlgmr.msra.gmra.mxu0 %vm65_vm1, %v205_v9 }
   0xe   :  { %p214_p4 = pnand %p213_p3, %p207_p0 }
  0x7f   :  { %v35_v12 = vpop.permute.xlu0 %34  ;;  %v117_v13 = vpop.permute.xlu1 %116 }
  0x83   :  { %v40_v17 = vpop.permute.xlu0 %39  ;;  %v122_v19 = vpop.permute.xlu1 %121 }
  0x87   :  { %v131_v26 = vpop.permute.xlu0 %130  ;;  %v136_v27 = vpop.permute.xlu1 %135 }
  0xcd   :  { %v103_v14 = vpop.f32.mrf.mxu0 }
  0xce   :  { %v104_v15 = vadd.f32 %v103_v14, %v35_v12 }
  0xcf   :  { %v192_v16 = vpop.f32.mrf.mxu0 }
  0xd0   :  { %v110_v18 = vmax.f32 %v104_v15, 0.0 }
  0xd1   :  { %v106_v20 = vpop.f32.mrf.mxu0 }
  0xd2   :  { %v107_v21 = vadd.f32 %v106_v20, %v40_v17  ;;  %v124_v23 = vmul.f32 %v117_v13, %v110_v18 }
  0xd3   :  { %v193_v22 = vpop.f32.mrf.mxu0 }
  0xd4   :  { %v111_v24 = vmax.f32 %v107_v21, 0.0  ;;  %v138_v28 = vadd.f32 %v131_v26, %v124_v23 }
  0xd6   :  { %v125_v25 = vmul.f32 %v122_v19, %v111_v24 }
  0xd8   :  { %v139_v29 = vadd.f32 %v136_v27, %v125_v25 }
  0xda   :  { %v178_v30 = vpack.c.bf16 %v139_v29, %v138_v28 }
  0xdc   :  { %179 = vst [vmem:[#allocation2] sm:$0xff] %v178_v30  }
  0xdd   :  { %217 = shalt.err (!%p214_p4)
}
  0xde   :  { %s232_s11 = smov 64   ;;  %s233_s12 = smov 4  }
  0xdf   :  { %161 = dma.vmem_to_hbm [thread:$0]  %s156_s3, 128, %s302_s5, [#allocation3], %s232_s11, %s232_s11, %s233_s12  }
  0xe0   :  { %226 = dma.done.wait [#allocation3], 128  }
  0xe1   :  { %227 = vsyncadd [#allocation3], 4294967168 }
  0xe2   :  { %165 = vsyncpa [#allocation3], 1 }

</bundles_post_ra>
